<compile_context>
chip_gen: v7x
topology: tpu7x:2x2x1
jax: 0.10.0
libtpu: 0.0.40
codegen_flags: <defaults>
</compile_context>

<pallas_src>
import jax
import jax.numpy as jnp
import numpy as np
from jax.experimental import pallas as pl
from jax.experimental.pallas import tpu as pltpu


# ---------------------------------------------------------------------------
# Parameter construction (deterministic, mirrors UNetIdnn.__init__ shapes)
# ---------------------------------------------------------------------------
def _layer_dims(num_layer):
    input_dim = 64 * 4
    enc = [32, 16]
    if num_layer > 2:
        enc = [64, 32] + enc
    if num_layer > 3:
        enc = [64 for _ in range(2 * (num_layer - 3))] + enc
    enc = [input_dim, enc[0]] + enc
    dec = [16, 32] + [64, 64]
    if num_layer > 2:
        dec = dec + [128 if i % 2 == 0 else 64 for i in range(2 * (num_layer - 2))]
    return enc, dec


def _make_linear_bn(key, in_dim, out_dim, with_bn):
    kw, kb, kg, kbeta, km, kv = jax.random.split(key, 6)
    w = jax.random.normal(kw, (in_dim, out_dim), jnp.float32) * (1.0 / np.sqrt(in_dim))
    b = jax.random.normal(kb, (out_dim,), jnp.float32) * 0.1
    if with_bn:
        gamma = 1.0 + 0.1 * jax.random.normal(kg, (out_dim,), jnp.float32)
        beta = 0.1 * jax.random.normal(kbeta, (out_dim,), jnp.float32)
        mean = 0.1 * jax.random.normal(km, (out_dim,), jnp.float32)
        var = jnp.abs(jax.random.normal(kv, (out_dim,), jnp.float32)) + 0.5
        inv_std = 1.0 / jnp.sqrt(var + 1e-5)
        scale = gamma * inv_std
        shift = b * scale + beta - mean * scale
    else:
        scale = jnp.ones((out_dim,), jnp.float32)
        shift = b
    return {"w": w, "scale": scale, "shift": shift}


def build_params(num_layer, key):
    enc_dims, dec_dims = _layer_dims(num_layer)
    n_enc = len(enc_dims) // 2
    n_dec = len(dec_dims) // 2
    keys = jax.random.split(key, n_enc + n_dec)
    encoder = [
        _make_linear_bn(keys[i], enc_dims[2 * i], enc_dims[2 * i + 1], with_bn=True)
        for i in range(n_enc)
    ]
    decoder = []
    for i in range(n_dec - 1):
        decoder.append(
            _make_linear_bn(keys[n_enc + i], dec_dims[2 * i], dec_dims[2 * i + 1],
                            with_bn=True))
    # final decoder layer: Linear only (no BN, no ReLU)
    decoder.append(
        _make_linear_bn(keys[-1], dec_dims[-2], dec_dims[-1], with_bn=False))
    return {"encoder": encoder, "decoder": decoder}


# ---------------------------------------------------------------------------
# Fold BN into weights, split decoder skip weights, cast matmul operands
# ---------------------------------------------------------------------------
def fold_params(params, act_dtype=jnp.bfloat16):
    n_enc = len(params["encoder"])
    n_dec = len(params["decoder"])
    enc_f = [{"w": (p["w"] * p["scale"][None, :]).astype(act_dtype),
              "shift": p["shift"].astype(jnp.float32)}
             for p in params["encoder"]]
    dec_f = []
    for i, p in enumerate(params["decoder"]):
        wf = p["w"] * p["scale"][None, :]
        if i == 0:
            w_parts = (wf.astype(act_dtype),)
        else:
            skip_dim = int(params["encoder"][n_enc - i - 1]["w"].shape[1])
            w_parts = (wf[:skip_dim].astype(act_dtype),
                       wf[skip_dim:].astype(act_dtype))
        dec_f.append({"w_parts": w_parts,
                      "shift": p["shift"].astype(jnp.float32),
                      "relu": i < n_dec - 1})
    return enc_f, dec_f


# ---------------------------------------------------------------------------
# Fused Pallas kernel builder: whole U-Net in one pallas_call
# ---------------------------------------------------------------------------
def make_fused_forward(params, *, tile_n=128, act_dtype=jnp.bfloat16):
    enc_f, dec_f = fold_params(params, act_dtype)
    n_enc, n_dec = len(enc_f), len(dec_f)
    final_out_dim = int(dec_f[-1]["w_parts"][0].shape[1])
    max_dim = max([final_out_dim] + [int(l["shift"].shape[0]) for l in enc_f + dec_f])
    lane_pad = ((max_dim + 127) // 128) * 128       # lane-dense output width

    # Flatten weights (final layer padded to lane_pad columns) and pack shifts.
    weights, enc_w_idx, dec_w_idx, shift_rows = [], [], [], []
    for layer in enc_f:
        enc_w_idx.append((len(weights),))
        weights.append(layer["w"])
        shift_rows.append(np.asarray(layer["shift"], np.float32))
    for i, layer in enumerate(dec_f):
        idxs = []
        for wpart in layer["w_parts"]:
            if i == n_dec - 1 and wpart.shape[1] < lane_pad:
                wpart = jnp.pad(wpart, ((0, 0), (0, lane_pad - wpart.shape[1])))
            idxs.append(len(weights))
            weights.append(wpart)
        dec_w_idx.append(tuple(idxs))
        sh = np.asarray(layer["shift"], np.float32)
        if i == n_dec - 1 and sh.shape[0] < lane_pad:
            sh = np.pad(sh, (0, lane_pad - sh.shape[0]))
        shift_rows.append(sh)

    rows_pad = ((len(shift_rows) + 7) // 8) * 8
    shifts_np = np.zeros((rows_pad, lane_pad), np.float32)
    for r, s in enumerate(shift_rows):
        shifts_np[r, : s.shape[0]] = s
    shifts_packed = jnp.asarray(shifts_np)

    n_w = len(weights)
    dec_relu = [l["relu"] for l in dec_f]
    ctx_dim = int(params["encoder"][0]["w"].shape[0])

    def kernel(ctx_ref, *rest):
        w_refs = rest[:n_w]
        sh_ref = rest[n_w]
        out_ref = rest[n_w + 1]

        def dense(parts, w_idx, row, relu):
            acc = None
            out_dim = None
            for h, wi in zip(parts, w_idx):
                w = w_refs[wi][...]
                out_dim = w.shape[1]
                t = jnp.dot(h, w, preferred_element_type=jnp.float32)
                acc = t if acc is None else acc + t
            y = acc + sh_ref[row:row + 1, :out_dim]      # f32 epilogue
            if relu:
                y = jnp.maximum(y, 0.0)
            return y

        # Encoder
        h = ctx_ref[...].astype(act_dtype)
        e_acts = []
        for li in range(n_enc):
            y = dense((h,), enc_w_idx[li], li, relu=True)
            h = y.astype(act_dtype)
            e_acts.append(h)

        # Decoder (skip concats as split-weight matmuls)
        d = None
        for li in range(n_dec):
            row = n_enc + li
            relu = dec_relu[li]
            parts = (e_acts[-1],) if li == 0 else (e_acts[n_enc - li - 1], d)
            y = dense(parts, dec_w_idx[li], row, relu)
            d = y.astype(act_dtype) if relu else y

        out_ref[...] = d.astype(out_ref.dtype)

    def forward(context_rows):
        n = context_rows.shape[0]
        xc = context_rows.astype(act_dtype)
        pad = (-n) % tile_n
        if pad:
            xc = jnp.pad(xc, ((0, pad), (0, 0)))
        n_padded = xc.shape[0]
        in_specs = [pl.BlockSpec((tile_n, ctx_dim), lambda i: (i, 0))]
        in_specs += [pl.BlockSpec(tuple(w.shape), lambda i: (0, 0)) for w in weights]
        in_specs += [pl.BlockSpec(shifts_packed.shape, lambda i: (0, 0))]
        out = pl.pallas_call(
            kernel,
            out_shape=jax.ShapeDtypeStruct((n_padded, lane_pad), jnp.float32),
            grid_spec=pltpu.PrefetchScalarGridSpec(
                num_scalar_prefetch=0,
                grid=(n_padded // tile_n,),
                in_specs=in_specs,
                out_specs=pl.BlockSpec((tile_n, lane_pad), lambda i: (i, 0)),
            ),
            compiler_params=pltpu.CompilerParams(
                dimension_semantics=("parallel",)),
        )(xc, *weights, shifts_packed)
        return out[:n, :final_out_dim]

    return forward


# ---------------------------------------------------------------------------
# Forward pass (preprocess glue in plain JAX, whole net in one Pallas call)
# ---------------------------------------------------------------------------
def unet_idnn_forward(x, fused_fn):
    # x: (B, T, 320) float32
    left = x[:, :, 0:128]
    middle = x[:, :, 128:192]
    right = x[:, :, 192:]
    context = jnp.concatenate([left, right], axis=-1).reshape(-1, 256)
    recon = fused_fn(context)
    return recon, middle.reshape(-1, 64)


# Pure-JAX reference mirroring the kernel's folded-BN / split-weight / bf16
# dtype handling exactly (validates the Pallas lowering).
def unet_idnn_reference(x, params, act_dtype=jnp.bfloat16):
    left = x[:, :, 0:128]
    middle = x[:, :, 128:192]
    right = x[:, :, 192:]
    context = jnp.concatenate([left, right], axis=-1).reshape(-1, 256)

    enc_f, dec_f = fold_params(params, act_dtype)
    h = context.astype(act_dtype)
    e = []
    for layer in enc_f:
        y = jnp.dot(h, layer["w"], preferred_element_type=jnp.float32)
        y = jnp.maximum(y + layer["shift"][None, :], 0.0)
        h = y.astype(act_dtype)
        e.append(h)
    d = None
    n_enc = len(e)
    for i, layer in enumerate(dec_f):
        parts = (e[-1],) if i == 0 else (e[n_enc - i - 1], d)
        y = None
        for p, w in zip(parts, layer["w_parts"]):
            t = jnp.dot(p, w, preferred_element_type=jnp.float32)
            y = t if y is None else y + t
        y = y + layer["shift"][None, :]
        if layer["relu"]:
            d = jnp.maximum(y, 0.0).astype(act_dtype)
        else:
            d = y
    return d, middle.reshape(-1, 64)


if __name__ == "__main__":
    num_layer = 3
    B, T = 2, 128                    # N = B*T = 256 frames -> 2 parallel row tiles
    key = jax.random.PRNGKey(0)
    k_x, k_p = jax.random.split(key)
    x = jax.random.normal(k_x, (B, T, 64 * 5), jnp.float32)     # (2, 128, 320)
    params = build_params(num_layer, k_p)

    fused_fn = make_fused_forward(params, tile_n=128)
    fwd = jax.jit(lambda xx: unet_idnn_forward(xx, fused_fn))
    recon, target = jax.block_until_ready(fwd(x))

    recon_ref, target_ref = unet_idnn_reference(x, params)

    assert recon.shape == (B * T, 64) and target.shape == (B * T, 64)
    np.testing.assert_allclose(np.asarray(recon), np.asarray(recon_ref),
                               rtol=2e-3, atol=2e-3)
    np.testing.assert_allclose(np.asarray(target), np.asarray(target_ref),
                               rtol=1e-6, atol=1e-6)
    print("KERNEL_OK")
</pallas_src>

<mosaic_0001>
module attributes {stable_mosaic.version = 11 : i64} {
  func.func @kernel(%arg0: i32, %arg1: memref<128x256xbf16, #tpu.memory_space<vmem>>, %arg2: memref<256x64xbf16, #tpu.memory_space<vmem>>, %arg3: memref<64x32xbf16, #tpu.memory_space<vmem>>, %arg4: memref<32x16xbf16, #tpu.memory_space<vmem>>, %arg5: memref<16x32xbf16, #tpu.memory_space<vmem>>, %arg6: memref<32x64xbf16, #tpu.memory_space<vmem>>, %arg7: memref<32x64xbf16, #tpu.memory_space<vmem>>, %arg8: memref<64x128xbf16, #tpu.memory_space<vmem>>, %arg9: memref<64x128xbf16, #tpu.memory_space<vmem>>, %arg10: memref<8x128xf32, #tpu.memory_space<vmem>>, %arg11: memref<128x128xf32, #tpu.memory_space<vmem>>) attributes {dimension_semantics = [#tpu.dimension_semantics<parallel>], iteration_bounds = array<i64: 2>, scalar_prefetch = 0 : i64, scratch_operands = 0 : i64, tpu.core_type = #tpu.core_type<tc>, window_params = [{transform_indices = @transform_0, window_bounds = array<i64: 128, 256>}, {pipeline_mode = #tpu.pipeline_mode<synchronous>, transform_indices = @transform_1, window_bounds = array<i64: 256, 64>}, {pipeline_mode = #tpu.pipeline_mode<synchronous>, transform_indices = @transform_2, window_bounds = array<i64: 64, 32>}, {pipeline_mode = #tpu.pipeline_mode<synchronous>, transform_indices = @transform_3, window_bounds = array<i64: 32, 16>}, {pipeline_mode = #tpu.pipeline_mode<synchronous>, transform_indices = @transform_4, window_bounds = array<i64: 16, 32>}, {pipeline_mode = #tpu.pipeline_mode<synchronous>, transform_indices = @transform_5, window_bounds = array<i64: 32, 64>}, {pipeline_mode = #tpu.pipeline_mode<synchronous>, transform_indices = @transform_6, window_bounds = array<i64: 32, 64>}, {pipeline_mode = #tpu.pipeline_mode<synchronous>, transform_indices = @transform_7, window_bounds = array<i64: 64, 128>}, {pipeline_mode = #tpu.pipeline_mode<synchronous>, transform_indices = @transform_8, window_bounds = array<i64: 64, 128>}, {pipeline_mode = #tpu.pipeline_mode<synchronous>, transform_indices = @transform_9, window_bounds = array<i64: 8, 128>}, {transform_indices = @transform_10, window_bounds = array<i64: 128, 128>}]} {
    %c0 = arith.constant 0 : index
    %c0_0 = arith.constant 0 : index
    %0 = vector.load %arg1[%c0, %c0_0] : memref<128x256xbf16, #tpu.memory_space<vmem>>, vector<128x256xbf16>
    %c0_1 = arith.constant 0 : index
    %c0_2 = arith.constant 0 : index
    %1 = vector.load %arg2[%c0_1, %c0_2] : memref<256x64xbf16, #tpu.memory_space<vmem>>, vector<256x64xbf16>
    %cst = arith.constant dense<0.000000e+00> : vector<128x64xf32>
    %2 = tpu.matmul %0, %1, %cst {dimension_numbers = #tpu.dot_dimension_numbers<[1], [0], [0], [1], [0, 0, 1, 1], [], []>} : vector<128x256xbf16>, vector<256x64xbf16>, vector<128x64xf32> -> vector<128x64xf32>
    %c0_3 = arith.constant 0 : index
    %c0_4 = arith.constant 0 : index
    %3 = vector.load %arg10[%c0_3, %c0_4] : memref<8x128xf32, #tpu.memory_space<vmem>>, vector<1x64xf32>
    %4 = vector.broadcast %3 : vector<1x64xf32> to vector<128x64xf32>
    %5 = arith.addf %2, %4 : vector<128x64xf32>
    %cst_5 = arith.constant 0.000000e+00 : f32
    %6 = vector.broadcast %cst_5 : f32 to vector<128x64xf32>
    %7 = arith.maximumf %5, %6 : vector<128x64xf32>
    %8 = arith.truncf %7 : vector<128x64xf32> to vector<128x64xbf16>
    %c0_6 = arith.constant 0 : index
    %c0_7 = arith.constant 0 : index
    %9 = vector.load %arg3[%c0_6, %c0_7] : memref<64x32xbf16, #tpu.memory_space<vmem>>, vector<64x32xbf16>
    %cst_8 = arith.constant dense<0.000000e+00> : vector<128x32xf32>
    %10 = tpu.matmul %8, %9, %cst_8 {dimension_numbers = #tpu.dot_dimension_numbers<[1], [0], [0], [1], [0, 0, 1, 1], [], []>} : vector<128x64xbf16>, vector<64x32xbf16>, vector<128x32xf32> -> vector<128x32xf32>
    %c1 = arith.constant 1 : index
    %c0_9 = arith.constant 0 : index
    %11 = vector.load %arg10[%c1, %c0_9] : memref<8x128xf32, #tpu.memory_space<vmem>>, vector<1x32xf32>
    %12 = vector.broadcast %11 : vector<1x32xf32> to vector<128x32xf32>
    %13 = arith.addf %10, %12 : vector<128x32xf32>
    %cst_10 = arith.constant 0.000000e+00 : f32
    %14 = vector.broadcast %cst_10 : f32 to vector<128x32xf32>
    %15 = arith.maximumf %13, %14 : vector<128x32xf32>
    %16 = arith.truncf %15 : vector<128x32xf32> to vector<128x32xbf16>
    %c0_11 = arith.constant 0 : index
    %c0_12 = arith.constant 0 : index
    %17 = vector.load %arg4[%c0_11, %c0_12] : memref<32x16xbf16, #tpu.memory_space<vmem>>, vector<32x16xbf16>
    %cst_13 = arith.constant dense<0.000000e+00> : vector<128x16xf32>
    %18 = tpu.matmul %16, %17, %cst_13 {dimension_numbers = #tpu.dot_dimension_numbers<[1], [0], [0], [1], [0, 0, 1, 1], [], []>} : vector<128x32xbf16>, vector<32x16xbf16>, vector<128x16xf32> -> vector<128x16xf32>
    %c2 = arith.constant 2 : index
    %c0_14 = arith.constant 0 : index
    %19 = vector.load %arg10[%c2, %c0_14] : memref<8x128xf32, #tpu.memory_space<vmem>>, vector<1x16xf32>
    %20 = vector.broadcast %19 : vector<1x16xf32> to vector<128x16xf32>
    %21 = arith.addf %18, %20 : vector<128x16xf32>
    %cst_15 = arith.constant 0.000000e+00 : f32
    %22 = vector.broadcast %cst_15 : f32 to vector<128x16xf32>
    %23 = arith.maximumf %21, %22 : vector<128x16xf32>
    %24 = arith.truncf %23 : vector<128x16xf32> to vector<128x16xbf16>
    %c0_16 = arith.constant 0 : index
    %c0_17 = arith.constant 0 : index
    %25 = vector.load %arg5[%c0_16, %c0_17] : memref<16x32xbf16, #tpu.memory_space<vmem>>, vector<16x32xbf16>
    %cst_18 = arith.constant dense<0.000000e+00> : vector<128x32xf32>
    %26 = tpu.matmul %24, %25, %cst_18 {dimension_numbers = #tpu.dot_dimension_numbers<[1], [0], [0], [1], [0, 0, 1, 1], [], []>} : vector<128x16xbf16>, vector<16x32xbf16>, vector<128x32xf32> -> vector<128x32xf32>
    %c3 = arith.constant 3 : index
    %c0_19 = arith.constant 0 : index
    %27 = vector.load %arg10[%c3, %c0_19] : memref<8x128xf32, #tpu.memory_space<vmem>>, vector<1x32xf32>
    %28 = vector.broadcast %27 : vector<1x32xf32> to vector<128x32xf32>
    %29 = arith.addf %26, %28 : vector<128x32xf32>
    %cst_20 = arith.constant 0.000000e+00 : f32
    %30 = vector.broadcast %cst_20 : f32 to vector<128x32xf32>
    %31 = arith.maximumf %29, %30 : vector<128x32xf32>
    %32 = arith.truncf %31 : vector<128x32xf32> to vector<128x32xbf16>
    %c0_21 = arith.constant 0 : index
    %c0_22 = arith.constant 0 : index
    %33 = vector.load %arg6[%c0_21, %c0_22] : memref<32x64xbf16, #tpu.memory_space<vmem>>, vector<32x64xbf16>
    %cst_23 = arith.constant dense<0.000000e+00> : vector<128x64xf32>
    %34 = tpu.matmul %16, %33, %cst_23 {dimension_numbers = #tpu.dot_dimension_numbers<[1], [0], [0], [1], [0, 0, 1, 1], [], []>} : vector<128x32xbf16>, vector<32x64xbf16>, vector<128x64xf32> -> vector<128x64xf32>
    %c0_24 = arith.constant 0 : index
    %c0_25 = arith.constant 0 : index
    %35 = vector.load %arg7[%c0_24, %c0_25] : memref<32x64xbf16, #tpu.memory_space<vmem>>, vector<32x64xbf16>
    %cst_26 = arith.constant dense<0.000000e+00> : vector<128x64xf32>
    %36 = tpu.matmul %32, %35, %cst_26 {dimension_numbers = #tpu.dot_dimension_numbers<[1], [0], [0], [1], [0, 0, 1, 1], [], []>} : vector<128x32xbf16>, vector<32x64xbf16>, vector<128x64xf32> -> vector<128x64xf32>
    %37 = arith.addf %34, %36 : vector<128x64xf32>
    %c4 = arith.constant 4 : index
    %c0_27 = arith.constant 0 : index
    %38 = vector.load %arg10[%c4, %c0_27] : memref<8x128xf32, #tpu.memory_space<vmem>>, vector<1x64xf32>
    %39 = vector.broadcast %38 : vector<1x64xf32> to vector<128x64xf32>
    %40 = arith.addf %37, %39 : vector<128x64xf32>
    %cst_28 = arith.constant 0.000000e+00 : f32
    %41 = vector.broadcast %cst_28 : f32 to vector<128x64xf32>
    %42 = arith.maximumf %40, %41 : vector<128x64xf32>
    %43 = arith.truncf %42 : vector<128x64xf32> to vector<128x64xbf16>
    %c0_29 = arith.constant 0 : index
    %c0_30 = arith.constant 0 : index
    %44 = vector.load %arg8[%c0_29, %c0_30] : memref<64x128xbf16, #tpu.memory_space<vmem>>, vector<64x128xbf16>
    %cst_31 = arith.constant dense<0.000000e+00> : vector<128x128xf32>
    %45 = tpu.matmul %8, %44, %cst_31 {dimension_numbers = #tpu.dot_dimension_numbers<[1], [0], [0], [1], [0, 0, 1, 1], [], []>} : vector<128x64xbf16>, vector<64x128xbf16>, vector<128x128xf32> -> vector<128x128xf32>
    %c0_32 = arith.constant 0 : index
    %c0_33 = arith.constant 0 : index
    %46 = vector.load %arg9[%c0_32, %c0_33] : memref<64x128xbf16, #tpu.memory_space<vmem>>, vector<64x128xbf16>
    %cst_34 = arith.constant dense<0.000000e+00> : vector<128x128xf32>
    %47 = tpu.matmul %43, %46, %cst_34 {dimension_numbers = #tpu.dot_dimension_numbers<[1], [0], [0], [1], [0, 0, 1, 1], [], []>} : vector<128x64xbf16>, vector<64x128xbf16>, vector<128x128xf32> -> vector<128x128xf32>
    %48 = arith.addf %45, %47 : vector<128x128xf32>
    %c5 = arith.constant 5 : index
    %c0_35 = arith.constant 0 : index
    %49 = vector.load %arg10[%c5, %c0_35] : memref<8x128xf32, #tpu.memory_space<vmem>>, vector<1x128xf32>
    %50 = vector.broadcast %49 : vector<1x128xf32> to vector<128x128xf32>
    %51 = arith.addf %48, %50 : vector<128x128xf32>
    %c0_36 = arith.constant 0 : index
    %c0_37 = arith.constant 0 : index
    %52 = vector.load %arg11[%c0_36, %c0_37] : memref<128x128xf32, #tpu.memory_space<vmem>>, vector<128x128xf32>
    tpu.vector_store %arg11[%c0_36, %c0_37], %51 {strides = array<i32>} : memref<128x128xf32, #tpu.memory_space<vmem>>, vector<128x128xf32>,
    return
  }
  func.func @transform_0(%arg0: i32) -> (i32, i32) {
    %c0_i32 = arith.constant 0 : i32
    %c0_i32_0 = arith.constant 0 : i32
    return %arg0, %c0_i32 : i32, i32
  }
  func.func @transform_1(%arg0: i32) -> (i32, i32) {
    %c0_i32 = arith.constant 0 : i32
    %c0_i32_0 = arith.constant 0 : i32
    %c0_i32_1 = arith.constant 0 : i32
    return %c0_i32, %c0_i32_0 : i32, i32
  }
  func.func @transform_2(%arg0: i32) -> (i32, i32) {
    %c0_i32 = arith.constant 0 : i32
    %c0_i32_0 = arith.constant 0 : i32
    %c0_i32_1 = arith.constant 0 : i32
    return %c0_i32, %c0_i32_0 : i32, i32
  }
  func.func @transform_3(%arg0: i32) -> (i32, i32) {
    %c0_i32 = arith.constant 0 : i32
    %c0_i32_0 = arith.constant 0 : i32
    %c0_i32_1 = arith.constant 0 : i32
    return %c0_i32, %c0_i32_0 : i32, i32
  }
  func.func @transform_4(%arg0: i32) -> (i32, i32) {
    %c0_i32 = arith.constant 0 : i32
    %c0_i32_0 = arith.constant 0 : i32
    %c0_i32_1 = arith.constant 0 : i32
    return %c0_i32, %c0_i32_0 : i32, i32
  }
  func.func @transform_5(%arg0: i32) -> (i32, i32) {
    %c0_i32 = arith.constant 0 : i32
    %c0_i32_0 = arith.constant 0 : i32
    %c0_i32_1 = arith.constant 0 : i32
    return %c0_i32, %c0_i32_0 : i32, i32
  }
  func.func @transform_6(%arg0: i32) -> (i32, i32) {
    %c0_i32 = arith.constant 0 : i32
    %c0_i32_0 = arith.constant 0 : i32
    %c0_i32_1 = arith.constant 0 : i32
    return %c0_i32, %c0_i32_0 : i32, i32
  }
  func.func @transform_7(%arg0: i32) -> (i32, i32) {
    %c0_i32 = arith.constant 0 : i32
    %c0_i32_0 = arith.constant 0 : i32
    %c0_i32_1 = arith.constant 0 : i32
    return %c0_i32, %c0_i32_0 : i32, i32
  }
  func.func @transform_8(%arg0: i32) -> (i32, i32) {
    %c0_i32 = arith.constant 0 : i32
    %c0_i32_0 = arith.constant 0 : i32
    %c0_i32_1 = arith.constant 0 : i32
    return %c0_i32, %c0_i32_0 : i32, i32
  }
  func.func @transform_9(%arg0: i32) -> (i32, i32) {
    %c0_i32 = arith.constant 0 : i32
    %c0_i32_0 = arith.constant 0 : i32
    %c0_i32_1 = arith.constant 0 : i32
    return %c0_i32, %c0_i32_0 : i32, i32
  }
  func.func @transform_10(%arg0: i32) -> (i32, i32) {
    %c0_i32 = arith.constant 0 : i32
    %c0_i32_0 = arith.constant 0 : i32
    return %arg0, %c0_i32 : i32, i32
  }
}

</mosaic_0001>

<bundles_post_ra>
// kernel: _lambda_.1
= control target key start
LH: loop header
LB: loop body
LE: loop exit
PB: predicated region body
PF: predicated region fallthrough
CT: control target
= control target key end

     0   :  { %s2481_s13 = smov 0   ;;  %s2820_s0 = inlined_call_operand.vmem [shape: bf16[256,256], index: 0, kind: input, shape index: {}]   ;;  %s2821_s1 = inlined_call_operand.vmem [shape: bf16[256,64], index: 1, kind: input, shape index: {}]   ;;  %s2822_s2 = inlined_call_operand.vmem [shape: bf16[64,32], index: 2, kind: input, shape index: {}]   ;;  %s2823_s3 = inlined_call_operand.vmem [shape: bf16[32,16], index: 3, kind: input, shape index: {}]   ;;  %s2824_s4 = inlined_call_operand.vmem [shape: bf16[16,32], index: 4, kind: input, shape index: {}]   ;;  %s2825_s5 = inlined_call_operand.vmem [shape: bf16[32,64], index: 5, kind: input, shape index: {}]   ;;  %s2826_s6 = inlined_call_operand.vmem [shape: bf16[32,64], index: 6, kind: input, shape index: {}]   ;;  %s2827_s7 = inlined_call_operand.vmem [shape: bf16[64,128], index: 7, kind: input, shape index: {}]   ;;  %s2828_s8 = inlined_call_operand.vmem [shape: bf16[64,128], index: 8, kind: input, shape index: {}]   ;;  %s2829_s9 = inlined_call_operand.vmem [shape: f32[8,128], index: 9, kind: input, shape index: {}]   ;;  %s2830_s10 = inlined_call_operand.vmem [shape: f32[256,128], index: 10, kind: output, shape index: {}]  }
   0x1 LB: > { %s1896_s14 = sadd.s32 4294967295, %s2424_s13   ;;  %p1900_p0 = scmp.ge.s32.totalorder %s2424_s13, 1  ;;  %s2424_s13 = sphi %s2481_s13, %s20_s13  }
   0x2   : > { %p314_p1 = scmp.lt.s32.totalorder %s2424_s13, 3 }
   0x4   : > { %p315_p2 = pnand %p1900_p0, %p314_p1 }
   0x5   : > { %v2359_v0 = vld [vmem:[%s2821_s1 + $0x40] sm:$0xff] (!%p315_p2)   ;;  %s1901_s17 = sshll.u32 (!%p315_p2), %s1896_s14, 4  ;;  %v2361_v2 = vld [vmem:[%s2821_s1 + $0x48] sm:$0xff] (!%p315_p2)   ;;  %v2363_v4 = vld [vmem:[%s2821_s1 + $0x50] sm:$0xff] (!%p315_p2)   ;;  %vm754_vm0 = vcmask (!%p315_p2), 523264   ;;  %vm921_vm1 = vcmask (!%p315_p2), 261120  }
   0x6   : > { %318 = sbr.rel (%p315_p2) target bundleno = 1487 (0x5cf), region = 60  ;;  %v2360_v1 = vld [vmem:[%s2821_s1] sm:$0xff] (!%p315_p2)   ;;  %2022 = vmatprep.subr.bf16.mxu0 (!%p315_p2), %v2359_v0  ;;  %v2362_v3 = vld [vmem:[%s2821_s1 + $0x8] sm:$0xff] (!%p315_p2)   ;;  %p354_p3 = scmp.lt.s32.totalorder (!%p315_p2), %s1901_s17, 31  ;;  %v2364_v5 = vld [vmem:[%s2821_s1 + $0x10] sm:$0xff] (!%p315_p2)   ;;  %vm1080_vm2 = vcmask (!%p315_p2), 130048  }
   0x7   : > { %2023 = vmatpush3.bf16.msra.mxu0 (!%p315_p2), %v2360_v1  ;;  %v2365_v6 = vld [vmem:[%s2821_s1 + $0x58] sm:$0xff] (!%p315_p2)   ;;  %v2367_v8 = vld [vmem:[%s2821_s1 + $0x60] sm:$0xff] (!%p315_p2)   ;;  %v2369_v10 = vld [vmem:[%s2821_s1 + $0x68] sm:$0xff] (!%p315_p2)  }
   0x8   : > { %2024 = vmatprep.subr.bf16.mxu0 (!%p315_p2), %v2361_v2  ;;  %v2366_v7 = vld [vmem:[%s2821_s1 + $0x18] sm:$0xff] (!%p315_p2)   ;;  %v2368_v9 = vld [vmem:[%s2821_s1 + $0x20] sm:$0xff] (!%p315_p2)   ;;  %v2370_v12 = vld [vmem:[%s2821_s1 + $0x28] sm:$0xff] (!%p315_p2)  }
   0x9   : > { %v2371_v13 = vld [vmem:[%s2821_s1 + $0x70] sm:$0xff] (!%p315_p2)   ;;  %v2373_v15 = vld [vmem:[%s2821_s1 + $0x78] sm:$0xff] (!%p315_p2)   ;;  %v2399_v17 = vld [vmem:[%s2822_s2] sm:$0xff] (!%p315_p2)  }
   0xa   : > { %v2372_v14 = vld [vmem:[%s2821_s1 + $0x30] sm:$0xff] (!%p315_p2)   ;;  %v2374_v16 = vld [vmem:[%s2821_s1 + $0x38] sm:$0xff] (!%p315_p2)   ;;  %v2400_v19 = vld [vmem:[%s2822_s2 + $0x8] sm:$0xff] (!%p315_p2)   ;;  %2311 = vmatprep.subr.bf16.mxu1 (!%p315_p2), %v2399_v17 }
   0xb   : > { %2025 = vmatpush3.bf16.msra.mxu0 (!%p315_p2), %v2362_v3  ;;  %2315 = vmatpush3.bf16.msra.mxu1 (!%p315_p2), %v2399_v17  ;;  %v2401_v34 = vld [vmem:[%s2822_s2 + $0x10] sm:$0xff] (!%p315_p2)   ;;  %v2402_v35 = vld [vmem:[%s2822_s2 + $0x18] sm:$0xff] (!%p315_p2)   ;;  %v2578_v37 = vld [vmem:[%s2829_s9] ss:$0 sm:$0xff] (!%p315_p2) }
   0xc   : > { %2026 = vmatprep.subr.bf16.mxu0 (!%p315_p2), %v2363_v4  ;;  %2312 = vmatprep.subr.bf16.mxu1 (!%p315_p2), %v2400_v19 }
   0xd   : > { %s2832_s17 = smov (!%p354_p3, %s1901_s17), 31 }
   0xe   : > { %s2021_s12 = sshll.u32 %s2832_s17, 3 }
   0xf   : > { %2027 = vmatpush3.bf16.msra.mxu0 %v2364_v5  ;;  %s2524_s19 = scalar_lea.vmem %s2820_s0, %s2021_s12  ;;  %2316 = vmatpush3.bf16.msra.mxu1 %v2400_v19  ;;  %s2799_s18 = scalar_lea.vmem %s2830_s10, %s2021_s12 }
  0x10   : > { %2028 = vmatprep.subr.bf16.mxu0 %v2365_v6  ;;  %v2377_v11 = vld [vmem:[%s2524_s19 + $0x4] ss:$8 sps:$4 sm:$0xff]   ;;  %v2375_v18 = vld [vmem:[%s2524_s19] ss:$8 sps:$4 sm:$0xff]   ;;  %v2378_v20 = vld [vmem:[%s2524_s19 + $0x14] ss:$8 sps:$4 sm:$0xff]   ;;  %2313 = vmatprep.subr.bf16.mxu1 %v2401_v34 }
  0x11   : > { %628 = vmatprep.mubr.bf16.mxu0 %v2377_v11  ;;  %v2380_v21 = vld [vmem:[%s2524_s19 + $0x10] ss:$8 sps:$4 sm:$0xff]   ;;  %v2381_v22 = vld [vmem:[%s2524_s19 + $0x24] ss:$8 sps:$4 sm:$0xff]   ;;  %v2383_v23 = vld [vmem:[%s2524_s19 + $0x20] ss:$8 sps:$4 sm:$0xff]  }
  0x12   : > { %v2384_v24 = vld [vmem:[%s2524_s19 + $0x34] ss:$8 sps:$4 sm:$0xff]   ;;  %v2386_v25 = vld [vmem:[%s2524_s19 + $0x30] ss:$8 sps:$4 sm:$0xff]   ;;  %v2387_v26 = vld [vmem:[%s2524_s19 + $0x44] ss:$8 sps:$4 sm:$0xff]  }
  0x13   : > { %2029 = vmatpush3.bf16.msra.mxu0 %v2366_v7  ;;  %v2389_v27 = vld [vmem:[%s2524_s19 + $0x40] ss:$8 sps:$4 sm:$0xff]   ;;  %v2390_v28 = vld [vmem:[%s2524_s19 + $0x54] ss:$8 sps:$4 sm:$0xff]   ;;  %v2392_v29 = vld [vmem:[%s2524_s19 + $0x50] ss:$8 sps:$4 sm:$0xff]   ;;  %2317 = vmatpush3.bf16.msra.mxu1 %v2401_v34 }
  0x14   : > { %2030 = vmatprep.subr.bf16.mxu0 %v2367_v8  ;;  %v2393_v30 = vld [vmem:[%s2524_s19 + $0x64] ss:$8 sps:$4 sm:$0xff]   ;;  %v2395_v31 = vld [vmem:[%s2524_s19 + $0x60] ss:$8 sps:$4 sm:$0xff]   ;;  %v2396_v32 = vld [vmem:[%s2524_s19 + $0x74] ss:$8 sps:$4 sm:$0xff]   ;;  %2314 = vmatprep.subr.bf16.mxu1 %v2402_v35 }
  0x15   : > { %v2398_v33 = vld [vmem:[%s2524_s19 + $0x70] ss:$8 sps:$4 sm:$0xff]  }
  0x17   : > { %2031 = vmatpush3.bf16.msra.mxu0 %v2368_v9  ;;  %2318 = vmatpush3.bf16.msra.mxu1 %v2402_v35 }
  0x18   : > { %2032 = vmatprep.subr.bf16.mxu0 %v2369_v10 }
  0x1b   : > { %2033 = vmatpush3.bf16.msra.mxu0 %v2370_v12 }
  0x1c   : > { %2034 = vmatprep.subr.bf16.mxu0 %v2371_v13 }
  0x1f   : > { %2035 = vmatpush3.bf16.msra.mxu0 %v2372_v14 }
  0x20   : > { %2036 = vmatprep.subr.bf16.mxu0 %v2373_v15 }
  0x23   : > { %2037 = vmatpush3.bf16.msra.mxu0 %v2374_v16 }
  0x24   : > { %2161 = vmatprep.subr.bf16.mxu0 %v2399_v17 }
  0x26   : > { %629 = vmatmul.mubr.bf16.vlgmr.msra.gmra.mrb[0].mxu0 %v2375_v18 }
  0x27   : > { %636 = vmatprep.mubr.bf16.mxu0 %v2378_v20  ;;  %2162 = vmatpush3.bf16.msra.mxu0 %v2399_v17 }
  0x28   : > { %2163 = vmatprep.subr.bf16.mxu0 %v2400_v19 }
  0x2b   : > { %2164 = vmatpush3.bf16.msra.mxu0 %v2400_v19 }
  0x2c   : > { %2165 = vmatprep.subr.bf16.mxu0 %v2401_v34 }
  0x2e   : > { %637 = vmatmul.mubr.bf16.gmra.mrb[4].mxu0 %v2380_v21 }
  0x2f   : > { %644 = vmatprep.mubr.bf16.mxu0 %v2381_v22  ;;  %2166 = vmatpush3.bf16.msra.mxu0 %v2401_v34 }
  0x30   : > { %2167 = vmatprep.subr.bf16.mxu0 %v2402_v35 }
  0x33   : > { %2168 = vmatpush3.bf16.msra.mxu0 %v2402_v35 }
  0x36   : > { %645 = vmatmul.mubr.bf16.gmra.mrb[8].mxu0 %v2383_v23 }
  0x37   : > { %652 = vmatprep.mubr.bf16.mxu0 %v2384_v24 }
  0x3e   : > { %653 = vmatmul.mubr.bf16.gmra.mrb[12].mxu0 %v2386_v25 }
  0x3f   : > { %660 = vmatprep.mubr.bf16.mxu0 %v2387_v26 }
  0x46   : > { %661 = vmatmul.mubr.bf16.gmra.mrb[16].mxu0 %v2389_v27 }
  0x47   : > { %668 = vmatprep.mubr.bf16.mxu0 %v2390_v28 }
  0x4e   : > { %669 = vmatmul.mubr.bf16.gmra.mrb[20].mxu0 %v2392_v29 }
  0x4f   : > { %676 = vmatprep.mubr.bf16.mxu0 %v2393_v30 }
  0x56   : > { %677 = vmatmul.mubr.bf16.gmra.mrb[24].mxu0 %v2395_v31 }
  0x57   : > { %684 = vmatprep.mubr.bf16.mxu0 %v2396_v32 }
  0x5e   : > { %685 = vmatmul.mubr.bf16.gmra.mrb[28].mxu0 %v2398_v33 }
  0xf9   : > { %v2038_v36 = vpop.f32.mrb[0].mxu0 }
  0xfa   : > { %v2039_v38 = vpop.f32.mrb[1].mxu0 }
  0xfb   : > { %v2040_v39 = vadd.f32 %v2039_v38, %v2038_v36  ;;  %v2041_v40 = vpop.f32.mrb[2].mxu0 }
  0xfc   : > { %v2042_v41 = vpop.f32.mrb[3].mxu0 }
  0xfd   : > { %v631_v42 = vadd.f32 %v2040_v39, %v2578_v37  ;;  %v2043_v43 = vadd.f32 %v2042_v41, %v2041_v40 }
  0xff   : > { %v634_v44 = vadd.f32 %v2043_v43, %v2578_v37  ;;  %v693_v45 = vmax.f32 %v631_v42, 0.0 }
 0x101   : > { %v694_v46 = vmax.f32 %v634_v44, 0.0  ;;  %v2044_v47 = vpop.f32.mrb[4].mxu0 }
 0x102   : > { %v2045_v48 = vpop.f32.mrb[5].mxu0 }
 0x103   : > { %v2582_v49 = vpack.c.bf16 %v694_v46, %v693_v45  ;;  %v2046_v50 = vadd.f32 %v2045_v48, %v2044_v47  ;;  %v2047_v51 = vpop.f32.mrb[6].mxu0 }
 0x104   : > { %v2048_v52 = vpop.f32.mrb[7].mxu0 }
 0x105   : > { %v639_v53 = vadd.f32 %v2046_v50, %v2578_v37  ;;  %v2049_v54 = vadd.f32 %v2048_v52, %v2047_v51  ;;  %2169 = vmatprep.mubr.msk.bf16.mxu0 %vm754_vm0, %v2582_v49 }
 0x107   : > { %v642_v55 = vadd.f32 %v2049_v54, %v2578_v37  ;;  %v695_v56 = vmax.f32 %v639_v53, 0.0 }
 0x109   : > { %v696_v57 = vmax.f32 %v642_v55, 0.0  ;;  %v2050_v58 = vpop.f32.mrb[8].mxu0 }
 0x10a   : > { %v2051_v59 = vpop.f32.mrb[9].mxu0 }
 0x10b   : > { %v2588_v60 = vpack.c.bf16 %v696_v57, %v695_v56  ;;  %v2052_v61 = vadd.f32 %v2051_v59, %v2050_v58  ;;  %v2053_v62 = vpop.f32.mrb[10].mxu0 }
 0x10c   : > { %v2054_v63 = vpop.f32.mrb[11].mxu0 }
 0x10d   : > { %v647_v0 = vadd.f32 %v2052_v61, %v2578_v37  ;;  %v2055_v1 = vadd.f32 %v2054_v63, %v2053_v62  ;;  %2170 = vmatmul.mubr.msk.bf16.vlgmr.msra.gmra.mrb[32].mxu0 %vm754_vm0, %v2588_v60 }
 0x10f   : > { %v650_v2 = vadd.f32 %v2055_v1, %v2578_v37  ;;  %v697_v3 = vmax.f32 %v647_v0, 0.0  ;;  %v2403_v0 = vld [vmem:[%s2823_s3] sm:$0xff]   ;;  %v2404_v1 = vld [vmem:[%s2823_s3 + $0x8] sm:$0xff]  }
 0x110   : > { %2185 = vmatprep.subr.bf16.mxu1 %v2403_v0 }
 0x111   : > { %v698_v4 = vmax.f32 %v650_v2, 0.0  ;;  %v2056_v5 = vpop.f32.mrb[12].mxu0 }
 0x112   : > { %v2057_v6 = vpop.f32.mrb[13].mxu0 }
 0x113   : > { %v2058_v7 = vadd.f32 %v2057_v6, %v2056_v5  ;;  %v2059_v8 = vpop.f32.mrb[14].mxu0  ;;  %v2594_v9 = vpack.c.bf16 %v698_v4, %v697_v3 }
 0x114   : > { %v2060_v10 = vpop.f32.mrb[15].mxu0 }
 0x115   : > { %v655_v11 = vadd.f32 %v2058_v7, %v2578_v37  ;;  %v2061_v12 = vadd.f32 %v2060_v10, %v2059_v8  ;;  %2173 = vmatprep.mubr.msk.bf16.mxu1 %vm754_vm0, %v2594_v9 }
 0x117   : > { %v658_v13 = vadd.f32 %v2061_v12, %v2578_v37  ;;  %v699_v14 = vmax.f32 %v655_v11, 0.0 }
 0x119   : > { %v700_v15 = vmax.f32 %v658_v13, 0.0  ;;  %v2062_v16 = vpop.f32.mrb[16].mxu0 }
 0x11a   : > { %v2063_v17 = vpop.f32.mrb[17].mxu0 }
 0x11b   : > { %v2600_v18 = vpack.c.bf16 %v700_v15, %v699_v14  ;;  %v2064_v19 = vadd.f32 %v2063_v17, %v2062_v16  ;;  %v2065_v20 = vpop.f32.mrb[18].mxu0 }
 0x11c   : > { %v2066_v21 = vpop.f32.mrb[19].mxu0 }
 0x11d   : > { %v663_v22 = vadd.f32 %v2064_v19, %v2578_v37  ;;  %v2067_v23 = vadd.f32 %v2066_v21, %v2065_v20  ;;  %2174 = vmatmul.mubr.msk.bf16.vlgmr.msra.gmra.mrb[0].mxu1 %vm754_vm0, %v2600_v18 }
 0x11e   : > { %2186 = vmatpush3.bf16.msra.mxu1 %v2403_v0 }
 0x11f   : > { %v666_v24 = vadd.f32 %v2067_v23, %v2578_v37  ;;  %v701_v25 = vmax.f32 %v663_v22, 0.0  ;;  %2187 = vmatprep.subr.bf16.mxu1 %v2404_v1 }
 0x121   : > { %v702_v26 = vmax.f32 %v666_v24, 0.0  ;;  %v2068_v27 = vpop.f32.mrb[20].mxu0 }
 0x122   : > { %v2069_v28 = vpop.f32.mrb[21].mxu0  ;;  %2188 = vmatpush3.bf16.msra.mxu1 %v2404_v1 }
 0x123   : > { %v2606_v29 = vpack.c.bf16 %v702_v26, %v701_v25  ;;  %v2070_v30 = vadd.f32 %v2069_v28, %v2068_v27  ;;  %v2071_v31 = vpop.f32.mrb[22].mxu0 }
 0x124   : > { %v2072_v32 = vpop.f32.mrb[23].mxu0 }
 0x125   : > { %v671_v33 = vadd.f32 %v2070_v30, %v2578_v37  ;;  %v2073_v34 = vadd.f32 %v2072_v32, %v2071_v31  ;;  %2177 = vmatprep.mubr.msk.bf16.mxu1 %vm754_vm0, %v2606_v29 }
 0x127   : > { %v674_v35 = vadd.f32 %v2073_v34, %v2578_v37  ;;  %v703_v36 = vmax.f32 %v671_v33, 0.0 }
 0x129   : > { %v704_v38 = vmax.f32 %v674_v35, 0.0  ;;  %v2074_v39 = vpop.f32.mrb[24].mxu0 }
 0x12a   : > { %v2075_v40 = vpop.f32.mrb[25].mxu0 }
 0x12b   : > { %v2612_v41 = vpack.c.bf16 %v704_v38, %v703_v36  ;;  %v2076_v42 = vadd.f32 %v2075_v40, %v2074_v39  ;;  %v2077_v43 = vpop.f32.mrb[26].mxu0 }
 0x12c   : > { %v2078_v44 = vpop.f32.mrb[27].mxu0 }
 0x12d   : > { %v679_v45 = vadd.f32 %v2076_v42, %v2578_v37  ;;  %v2079_v46 = vadd.f32 %v2078_v44, %v2077_v43  ;;  %2178 = vmatmul.mubr.msk.bf16.gmra.mrb[4].mxu1 %vm754_vm0, %v2612_v41 }
 0x12f   : > { %v682_v47 = vadd.f32 %v2079_v46, %v2578_v37  ;;  %v705_v48 = vmax.f32 %v679_v45, 0.0 }
 0x131   : > { %v706_v50 = vmax.f32 %v682_v47, 0.0  ;;  %v2080_v51 = vpop.f32.mrb[28].mxu0 }
 0x132   : > { %v2081_v52 = vpop.f32.mrb[29].mxu0 }
 0x133   : > { %v2618_v53 = vpack.c.bf16 %v706_v50, %v705_v48  ;;  %v2082_v54 = vadd.f32 %v2081_v52, %v2080_v51  ;;  %v2083_v55 = vpop.f32.mrb[30].mxu0 }
 0x134   : > { %v2084_v56 = vpop.f32.mrb[31].mxu0 }
 0x135   : > { %v687_v57 = vadd.f32 %v2082_v54, %v2578_v37  ;;  %v2085_v58 = vadd.f32 %v2084_v56, %v2083_v55  ;;  %2181 = vmatprep.mubr.msk.bf16.mxu1 %vm754_vm0, %v2618_v53 }
 0x137   : > { %v690_v59 = vadd.f32 %v2085_v58, %v2578_v37  ;;  %v707_v61 = vmax.f32 %v687_v57, 0.0  ;;  %v1939_v37 = vld [vmem:[%s2829_s9 + $0x1] ss:$0 sm:$0xff] }
 0x139   : > { %v708_v62 = vmax.f32 %v690_v59, 0.0 }
 0x13b   : > { %v2624_v63 = vpack.c.bf16 %v708_v62, %v707_v61 }
 0x13d   : > { %2182 = vmatmul.mubr.msk.bf16.gmra.mrb[8].mxu1 %vm754_vm0, %v2624_v63 }
 0x1e0   : > { %v2171_v2 = vpop.f32.mrb[32].mxu0 }
 0x1e1   : > { %v822_v3 = vadd.f32 %v2171_v2, %v1939_v37  ;;  %v813_v4 = vpop.f32.mrb[33].mxu0 }
 0x1e2   : > { %v814_v5 = vadd.f32 %v1939_v37, %v813_v4  ;;  %v2172_v6 = vpop.f32.mrb[34].mxu0 }
 0x1e3   : > { %v825_v7 = vadd.f32 %v2172_v6, %v1939_v37  ;;  %v816_v8 = vpop.f32.mrb[35].mxu0  ;;  %v878_v11 = vmax.f32 %v822_v3, 0.0  ;;  %v2405_v3 = vld [vmem:[%s2824_s4] sm:$0xff]  }
 0x1e4   : > { %v817_v10 = vadd.f32 %v1939_v37, %v816_v8  ;;  %v876_v13 = vmax.f32 %v814_v5, 0.0  ;;  %2205 = vmatprep.subr.bf16.mxu1 %v2405_v3 }
 0x1e5   : > { %v879_v12 = vmax.f32 %v825_v7, 0.0 }
 0x1e6   : > { %v877_v14 = vmax.f32 %v817_v10, 0.0 }
 0x1e7   : > { %v2637_v15 = vpack.c.bf16 %v879_v12, %v878_v11 }
 0x1e8   : > { %v2639_v16 = vpack.c.bf16 %v877_v14, %v876_v13 }
 0x1ea   : > { %2189 = vmatprep.mubr.msk.bf16.mxu1 %vm921_vm1, %v2639_v16 }
 0x1eb   : > { %2190 = vmatmul.mubr.msk.bf16.vlgmr.msra.gmra.mrb[12].mxu1 %vm921_vm1, %v2637_v15 }
 0x1ec   : > { %2206 = vmatpush3.bf16.msra.mxu1 %v2405_v3 }
 0x1f0   : > { %v2175_v17 = vpop.f32.mrb[0].mxu1 }
 0x1f1   : > { %v838_v19 = vadd.f32 %v2175_v17, %v1939_v37  ;;  %v829_v20 = vpop.f32.mrb[1].mxu1 }
 0x1f2   : > { %v830_v21 = vadd.f32 %v1939_v37, %v829_v20  ;;  %v2176_v22 = vpop.f32.mrb[2].mxu1 }
 0x1f3   : > { %v841_v23 = vadd.f32 %v2176_v22, %v1939_v37  ;;  %v832_v24 = vpop.f32.mrb[3].mxu1  ;;  %v882_v26 = vmax.f32 %v838_v19, 0.0 }
 0x1f4   : > { %v833_v25 = vadd.f32 %v1939_v37, %v832_v24  ;;  %v880_v28 = vmax.f32 %v830_v21, 0.0 }
 0x1f5   : > { %v883_v27 = vmax.f32 %v841_v23, 0.0 }
 0x1f6   : > { %v881_v30 = vmax.f32 %v833_v25, 0.0 }
 0x1f7   : > { %v2645_v31 = vpack.c.bf16 %v883_v27, %v882_v26 }
 0x1f8   : > { %v2647_v32 = vpack.c.bf16 %v881_v30, %v880_v28 }
 0x1fa   : > { %2193 = vmatprep.mubr.msk.bf16.mxu1 %vm921_vm1, %v2647_v32 }
 0x1fb   : > { %2194 = vmatmul.mubr.msk.bf16.gmra.mrb[16].mxu1 %vm921_vm1, %v2645_v31 }
 0x200   : > { %v2179_v33 = vpop.f32.mrb[4].mxu1 }
 0x201   : > { %v854_v34 = vadd.f32 %v2179_v33, %v1939_v37  ;;  %v845_v35 = vpop.f32.mrb[5].mxu1 }
 0x202   : > { %v846_v36 = vadd.f32 %v1939_v37, %v845_v35  ;;  %v2180_v38 = vpop.f32.mrb[6].mxu1 }
 0x203   : > { %v857_v39 = vadd.f32 %v2180_v38, %v1939_v37  ;;  %v848_v40 = vpop.f32.mrb[7].mxu1  ;;  %v886_v43 = vmax.f32 %v854_v34, 0.0 }
 0x204   : > { %v849_v42 = vadd.f32 %v1939_v37, %v848_v40  ;;  %v884_v45 = vmax.f32 %v846_v36, 0.0 }
 0x205   : > { %v887_v44 = vmax.f32 %v857_v39, 0.0 }
 0x206   : > { %v885_v46 = vmax.f32 %v849_v42, 0.0 }
 0x207   : > { %v2653_v47 = vpack.c.bf16 %v887_v44, %v886_v43 }
 0x208   : > { %v2655_v48 = vpack.c.bf16 %v885_v46, %v884_v45 }
 0x20a   : > { %2197 = vmatprep.mubr.msk.bf16.mxu1 %vm921_vm1, %v2655_v48 }
 0x20b   : > { %2198 = vmatmul.mubr.msk.bf16.gmra.mrb[20].mxu1 %vm921_vm1, %v2653_v47 }
 0x210   : > { %v2183_v50 = vpop.f32.mrb[8].mxu1 }
 0x211   : > { %v870_v51 = vadd.f32 %v2183_v50, %v1939_v37  ;;  %v861_v52 = vpop.f32.mrb[9].mxu1 }
 0x212   : > { %v862_v54 = vadd.f32 %v1939_v37, %v861_v52  ;;  %v2184_v55 = vpop.f32.mrb[10].mxu1 }
 0x213   : > { %v873_v56 = vadd.f32 %v2184_v55, %v1939_v37  ;;  %v864_v57 = vpop.f32.mrb[11].mxu1  ;;  %v890_v59 = vmax.f32 %v870_v51, 0.0 }
 0x214   : > { %v865_v58 = vadd.f32 %v1939_v37, %v864_v57  ;;  %v888_v62 = vmax.f32 %v862_v54, 0.0  ;;  %v1952_v37 = vld [vmem:[%s2829_s9 + $0x2] ss:$0 sm:$0xff] }
 0x215   : > { %v891_v61 = vmax.f32 %v873_v56, 0.0 }
 0x216   : > { %v889_v0 = vmax.f32 %v865_v58, 0.0 }
 0x217   : > { %v2661_v1 = vpack.c.bf16 %v891_v61, %v890_v59 }
 0x218   : > { %v2663_v2 = vpack.c.bf16 %v889_v0, %v888_v62 }
 0x21a   : > { %2201 = vmatprep.mubr.msk.bf16.mxu1 %vm921_vm1, %v2663_v2 }
 0x21b   : > { %2202 = vmatmul.mubr.msk.bf16.gmra.mrb[24].mxu1 %vm921_vm1, %v2661_v1 }
 0x2be   : > { %v2191_v4 = vpop.f32.mrb[12].mxu1 }
 0x2bf   : > { %v989_v5 = vadd.f32 %v2191_v4, %v1952_v37  ;;  %v980_v6 = vpop.f32.mrb[13].mxu1 }
 0x2c0   : > { %v981_v7 = vadd.f32 %v1952_v37, %v980_v6  ;;  %v2192_v8 = vpop.f32.mrb[14].mxu1 }
 0x2c1   : > { %v992_v10 = vadd.f32 %v2192_v8, %v1952_v37  ;;  %v983_v11 = vpop.f32.mrb[15].mxu1  ;;  %v1045_v13 = vmax.f32 %v989_v5, 0.0 }
 0x2c2   : > { %v984_v12 = vadd.f32 %v1952_v37, %v983_v11  ;;  %v1043_v17 = vmax.f32 %v981_v7, 0.0 }
 0x2c3   : > { %v1046_v14 = vmax.f32 %v992_v10, 0.0 }
 0x2c4   : > { %v1044_v19 = vmax.f32 %v984_v12, 0.0 }
 0x2c5   : > { %v1060_v20 = vpack.c.bf16 %v1046_v14, %v1045_v13  ;;  %v2406_v14 = vld [vmem:[%s2826_s6] sm:$0xff]  }
 0x2c6   : > { %v1059_v21 = vpack.c.bf16 %v1044_v19, %v1043_v17  ;;  %2223 = vmatprep.subr.bf16.mxu0 %v2406_v14  ;;  %v2408_v17 = vld [vmem:[%s2825_s5] sm:$0xff]  }
 0x2c7   : > { %2224 = vmatpush3.bf16.msra.mxu0 %v2406_v14  ;;  %v2410_v19 = vld [vmem:[%s2828_s8] sm:$0xff]  }
 0x2c8   : > { %2207 = vmatprep.mubr.msk.bf16.mxu1 %vm1080_vm2, %v1059_v21  ;;  %2263 = vmatprep.subr.bf16.mxu1 %v2410_v19  ;;  %v2412_v21 = vld [vmem:[%s2828_s8 + $0x10] sm:$0xff]  }
 0x2c9   : > { %2208 = vmatmul.mubr.msk.bf16.vlgmr.msra.gmra.mrb[28].mxu1 %vm1080_vm2, %v1060_v20  ;;  %v2411_v20 = vld [vmem:[%s2828_s8 + $0x8] sm:$0xff]  }
 0x2ca   : > { %2264 = vmatpush3.bf16.msra.mxu1 %v2410_v19 }
 0x2cb   : > { %2265 = vmatprep.subr.bf16.mxu1 %v2411_v20 }
 0x2ce   : > { %v2195_v22 = vpop.f32.mrb[16].mxu1  ;;  %2266 = vmatpush3.bf16.msra.mxu1 %v2411_v20 }
 0x2cf   : > { %v1005_v23 = vadd.f32 %v2195_v22, %v1952_v37  ;;  %v996_v24 = vpop.f32.mrb[17].mxu1  ;;  %2267 = vmatprep.subr.bf16.mxu1 %v2412_v21  ;;  %v1963_v22 = vld [vmem:[%s2829_s9 + $0x3] ss:$0 sm:$0xff] }
 0x2d0   : > { %v997_v25 = vadd.f32 %v1952_v37, %v996_v24  ;;  %v2196_v26 = vpop.f32.mrb[18].mxu1 }
 0x2d1   : > { %v1008_v27 = vadd.f32 %v2196_v26, %v1952_v37  ;;  %v999_v28 = vpop.f32.mrb[19].mxu1  ;;  %v1049_v33 = vmax.f32 %v1005_v23, 0.0 }
 0x2d2   : > { %v1000_v30 = vadd.f32 %v1952_v37, %v999_v28  ;;  %v1047_v35 = vmax.f32 %v997_v25, 0.0  ;;  %2268 = vmatpush3.bf16.msra.mxu1 %v2412_v21 }
 0x2d3   : > { %v1050_v34 = vmax.f32 %v1008_v27, 0.0 }
 0x2d4   : > { %v1048_v36 = vmax.f32 %v1000_v30, 0.0 }
 0x2d5   : > { %v1062_v38 = vpack.c.bf16 %v1050_v34, %v1049_v33 }
 0x2d6   : > { %v1061_v39 = vpack.c.bf16 %v1048_v36, %v1047_v35 }
 0x2d8   : > { %2211 = vmatprep.mubr.msk.bf16.mxu1 %vm1080_vm2, %v1061_v39 }
 0x2d9   : > { %2212 = vmatmul.mubr.msk.bf16.gmra.mrb[32].mxu1 %vm1080_vm2, %v1062_v38 }
 0x2de   : > { %v2199_v40 = vpop.f32.mrb[20].mxu1 }
 0x2df   : > { %v1021_v42 = vadd.f32 %v2199_v40, %v1952_v37  ;;  %v1012_v43 = vpop.f32.mrb[21].mxu1 }
 0x2e0   : > { %v1013_v44 = vadd.f32 %v1952_v37, %v1012_v43  ;;  %v2200_v45 = vpop.f32.mrb[22].mxu1 }
 0x2e1   : > { %v1024_v46 = vadd.f32 %v2200_v45, %v1952_v37  ;;  %v1015_v50 = vpop.f32.mrb[23].mxu1  ;;  %v1053_v52 = vmax.f32 %v1021_v42, 0.0  ;;  %v2409_v42 = vld [vmem:[%s2825_s5 + $0x8] sm:$0xff]  }
 0x2e2   : > { %v1016_v51 = vadd.f32 %v1952_v37, %v1015_v50  ;;  %v1051_v55 = vmax.f32 %v1013_v44, 0.0 }
 0x2e3   : > { %v1054_v54 = vmax.f32 %v1024_v46, 0.0 }
 0x2e4   : > { %v1052_v56 = vmax.f32 %v1016_v51, 0.0 }
 0x2e5   : > { %v1064_v57 = vpack.c.bf16 %v1054_v54, %v1053_v52 }
 0x2e6   : > { %v1063_v58 = vpack.c.bf16 %v1052_v56, %v1051_v55 }
 0x2e8   : > { %2215 = vmatprep.mubr.msk.bf16.mxu1 %vm1080_vm2, %v1063_v58 }
 0x2e9   : > { %2216 = vmatmul.mubr.msk.bf16.gmra.mrb[36].mxu1 %vm1080_vm2, %v1064_v57 }
 0x2ee   : > { %v2203_v59 = vpop.f32.mrb[24].mxu1 }
 0x2ef   : > { %v1037_v61 = vadd.f32 %v2203_v59, %v1952_v37  ;;  %v1028_v62 = vpop.f32.mrb[25].mxu1 }
 0x2f0   : > { %v1029_v0 = vadd.f32 %v1952_v37, %v1028_v62  ;;  %v2204_v3 = vpop.f32.mrb[26].mxu1 }
 0x2f1   : > { %v1040_v4 = vadd.f32 %v2204_v3, %v1952_v37  ;;  %v1031_v5 = vpop.f32.mrb[27].mxu1  ;;  %v1057_v7 = vmax.f32 %v1037_v61, 0.0 }
 0x2f2   : > { %v1032_v6 = vadd.f32 %v1952_v37, %v1031_v5  ;;  %v1055_v10 = vmax.f32 %v1029_v0, 0.0  ;;  %v2407_v37 = vld [vmem:[%s2826_s6 + $0x8] sm:$0xff]  }
 0x2f3   : > { %v1058_v8 = vmax.f32 %v1040_v4, 0.0  ;;  %2225 = vmatprep.subr.bf16.mxu0 %v2407_v37 }
 0x2f4   : > { %v1056_v11 = vmax.f32 %v1032_v6, 0.0  ;;  %2226 = vmatpush3.bf16.msra.mxu0 %v2407_v37 }
 0x2f5   : > { %v1066_v12 = vpack.c.bf16 %v1058_v8, %v1057_v7  ;;  %2243 = vmatprep.subr.bf16.mxu0 %v2408_v17 }
 0x2f6   : > { %v1065_v13 = vpack.c.bf16 %v1056_v11, %v1055_v10 }
 0x2f8   : > { %2219 = vmatprep.mubr.msk.bf16.mxu1 %vm1080_vm2, %v1065_v13 }
 0x2f9   : > { %2220 = vmatmul.mubr.msk.bf16.gmra.mrb[40].mxu1 %vm1080_vm2, %v1066_v12 }
 0x39c   : > { %v2209_v23 = vpop.f32.mrb[28].mxu1 }
 0x39d   : > { %v1148_v24 = vadd.f32 %v2209_v23, %v1963_v22  ;;  %v1139_v25 = vpop.f32.mrb[29].mxu1 }
 0x39e   : > { %v1140_v26 = vadd.f32 %v1963_v22, %v1139_v25  ;;  %v2210_v27 = vpop.f32.mrb[30].mxu1 }
 0x39f   : > { %v1151_v28 = vadd.f32 %v2210_v27, %v1963_v22  ;;  %v1142_v30 = vpop.f32.mrb[31].mxu1  ;;  %v1204_v34 = vmax.f32 %v1148_v24, 0.0 }
 0x3a0   : > { %v1143_v33 = vadd.f32 %v1963_v22, %v1142_v30  ;;  %v1202_v36 = vmax.f32 %v1140_v26, 0.0 }
 0x3a1   : > { %v1205_v35 = vmax.f32 %v1151_v28, 0.0 }
 0x3a2   : > { %v1203_v38 = vmax.f32 %v1143_v33, 0.0 }
 0x3a3   : > { %v1219_v39 = vpack.c.bf16 %v1205_v35, %v1204_v34 }
 0x3a4   : > { %v1218_v40 = vpack.c.bf16 %v1203_v38, %v1202_v36 }
 0x3a6   : > { %2227 = vmatprep.mubr.msk.bf16.mxu0 %vm921_vm1, %v1218_v40 }
 0x3a7   : > { %2228 = vmatmul.mubr.msk.bf16.vlgmr.msra.gmra.mrb[36].mxu0 %vm921_vm1, %v1219_v39 }
 0x3a8   : > { %2244 = vmatpush3.bf16.msra.mxu0 %v2408_v17 }
 0x3a9   : > { %2245 = vmatprep.subr.bf16.mxu0 %v2409_v42 }
 0x3ac   : > { %v2213_v43 = vpop.f32.mrb[32].mxu1  ;;  %2246 = vmatpush3.bf16.msra.mxu0 %v2409_v42 }
 0x3ad   : > { %v1164_v44 = vadd.f32 %v2213_v43, %v1963_v22  ;;  %v1155_v45 = vpop.f32.mrb[33].mxu1 }
 0x3ae   : > { %v1156_v46 = vadd.f32 %v1963_v22, %v1155_v45  ;;  %v2214_v50 = vpop.f32.mrb[34].mxu1 }
 0x3af   : > { %v1167_v51 = vadd.f32 %v2214_v50, %v1963_v22  ;;  %v1158_v52 = vpop.f32.mrb[35].mxu1  ;;  %v1208_v55 = vmax.f32 %v1164_v44, 0.0 }
 0x3b0   : > { %v1159_v54 = vadd.f32 %v1963_v22, %v1158_v52  ;;  %v1206_v57 = vmax.f32 %v1156_v46, 0.0  ;;  %v2415_v52 = vld [vmem:[%s2827_s7 + $0x8] sm:$0xff]  }
 0x3b1   : > { %v1209_v56 = vmax.f32 %v1167_v51, 0.0 }
 0x3b2   : > { %v1207_v58 = vmax.f32 %v1159_v54, 0.0 }
 0x3b3   : > { %v1221_v59 = vpack.c.bf16 %v1209_v56, %v1208_v55 }
 0x3b4   : > { %v1220_v61 = vpack.c.bf16 %v1207_v58, %v1206_v57 }
 0x3b6   : > { %2231 = vmatprep.mubr.msk.bf16.mxu0 %vm921_vm1, %v1220_v61 }
 0x3b7   : > { %2232 = vmatmul.mubr.msk.bf16.gmra.mrb[40].mxu0 %vm921_vm1, %v1221_v59 }
 0x3bc   : > { %v2217_v62 = vpop.f32.mrb[36].mxu1 }
 0x3bd   : > { %v1180_v0 = vadd.f32 %v2217_v62, %v1963_v22  ;;  %v1171_v3 = vpop.f32.mrb[37].mxu1  ;;  %v2416_v62 = vld [vmem:[%s2827_s7 + $0x10] sm:$0xff]  }
 0x3be   : > { %v1172_v4 = vadd.f32 %v1963_v22, %v1171_v3  ;;  %v2218_v5 = vpop.f32.mrb[38].mxu1 }
 0x3bf   : > { %v1183_v6 = vadd.f32 %v2218_v5, %v1963_v22  ;;  %v1174_v7 = vpop.f32.mrb[39].mxu1  ;;  %v1212_v10 = vmax.f32 %v1180_v0, 0.0 }
 0x3c0   : > { %v1175_v8 = vadd.f32 %v1963_v22, %v1174_v7  ;;  %v1210_v12 = vmax.f32 %v1172_v4, 0.0 }
 0x3c1   : > { %v1213_v11 = vmax.f32 %v1183_v6, 0.0 }
 0x3c2   : > { %v1211_v13 = vmax.f32 %v1175_v8, 0.0 }
 0x3c3   : > { %v1223_v14 = vpack.c.bf16 %v1213_v11, %v1212_v10  ;;  %v2417_v10 = vld [vmem:[%s2827_s7 + $0x18] sm:$0xff]  }
 0x3c4   : > { %v1222_v37 = vpack.c.bf16 %v1211_v13, %v1210_v12 }
 0x3c6   : > { %2235 = vmatprep.mubr.msk.bf16.mxu0 %vm921_vm1, %v1222_v37 }
 0x3c7   : > { %2236 = vmatmul.mubr.msk.bf16.gmra.mrb[44].mxu0 %vm921_vm1, %v1223_v14 }
 0x3cc   : > { %v2221_v17 = vpop.f32.mrb[40].mxu1 }
 0x3cd   : > { %v1196_v19 = vadd.f32 %v2221_v17, %v1963_v22  ;;  %v1187_v20 = vpop.f32.mrb[41].mxu1 }
 0x3ce   : > { %v1188_v21 = vadd.f32 %v1963_v22, %v1187_v20  ;;  %v2222_v23 = vpop.f32.mrb[42].mxu1 }
 0x3cf   : > { %v1199_v24 = vadd.f32 %v2222_v23, %v1963_v22  ;;  %v1190_v25 = vpop.f32.mrb[43].mxu1  ;;  %v1216_v27 = vmax.f32 %v1196_v19, 0.0 }
 0x3d0   : > { %v1191_v26 = vadd.f32 %v1963_v22, %v1190_v25  ;;  %v1214_v30 = vmax.f32 %v1188_v21, 0.0 }
 0x3d1   : > { %v1217_v28 = vmax.f32 %v1199_v24, 0.0 }
 0x3d2   : > { %v1215_v33 = vmax.f32 %v1191_v26, 0.0 }
 0x3d3   : > { %v1225_v34 = vpack.c.bf16 %v1217_v28, %v1216_v27 }
 0x3d4   : > { %v1224_v35 = vpack.c.bf16 %v1215_v33, %v1214_v30 }
 0x3d6   : > { %2239 = vmatprep.mubr.msk.bf16.mxu0 %vm921_vm1, %v1224_v35 }
 0x3d7   : > { %2240 = vmatmul.mubr.msk.bf16.gmra.mrb[48].mxu0 %vm921_vm1, %v1225_v34 }
 0x3d8   : > { %2247 = vmatprep.mubr.msk.bf16.mxu0 %vm921_vm1, %v2639_v16  ;;  %v2414_v16 = vld [vmem:[%s2827_s7] sm:$0xff]  }
 0x3df   : > { %2248 = vmatmul.mubr.msk.bf16.vlgmr.msra.gmra.mrb[36].mxu0 %vm921_vm1, %v2637_v15  ;;  %v2413_v15 = vld [vmem:[%s2828_s8 + $0x18] sm:$0xff]  }
 0x3e0   : > { %2251 = vmatprep.mubr.msk.bf16.mxu0 %vm921_vm1, %v2647_v32  ;;  %2269 = vmatprep.subr.bf16.mxu1 %v2413_v15 }
 0x3e1   : > { %2270 = vmatpush3.bf16.msra.mxu1 %v2413_v15 }
 0x3e2   : > { %2287 = vmatprep.subr.bf16.mxu1 %v2414_v16 }
 0x3e7   : > { %2252 = vmatmul.mubr.msk.bf16.gmra.mrb[40].mxu0 %vm921_vm1, %v2645_v31  ;;  %v2740_v31 = vld [vmem:[%s2829_s9 + $0x4] ss:$0 sm:$0xff] }
 0x3e8   : > { %2255 = vmatprep.mubr.msk.bf16.mxu0 %vm921_vm1, %v2655_v48 }
 0x3ef   : > { %2256 = vmatmul.mubr.msk.bf16.gmra.mrb[44].mxu0 %vm921_vm1, %v2653_v47 }
 0x3f0   : > { %2259 = vmatprep.mubr.msk.bf16.mxu0 %vm921_vm1, %v2663_v2 }
 0x3f7   : > { %2260 = vmatmul.mubr.msk.bf16.gmra.mrb[48].mxu0 %vm921_vm1, %v2661_v1 }
 0x4b2   : > { %v2249_v32 = vpop.f32.mrb[36].mxu0 }
 0x4b3   : > { %v1483_v47 = vadd.f32 %v2249_v32, %v2740_v31  ;;  %v1413_v48 = vpop.f32.mrb[37].mxu0 }
 0x4b4   : > { %v1481_v1 = vadd.f32 %v2740_v31, %v1413_v48  ;;  %v2250_v2 = vpop.f32.mrb[38].mxu0 }
 0x4b5   : > { %v1484_v22 = vadd.f32 %v2250_v2, %v2740_v31  ;;  %v1416_v36 = vpop.f32.mrb[39].mxu0  ;;  %v1499_v39 = vmax.f32 %v1483_v47, 0.0 }
 0x4b6   : > { %v1482_v38 = vadd.f32 %v2740_v31, %v1416_v36  ;;  %v1497_v42 = vmax.f32 %v1481_v1, 0.0 }
 0x4b7   : > { %v1500_v40 = vmax.f32 %v1484_v22, 0.0 }
 0x4b8   : > { %v1498_v43 = vmax.f32 %v1482_v38, 0.0 }
 0x4b9   : > { %v1514_v44 = vpack.c.bf16 %v1500_v40, %v1499_v39 }
 0x4ba   : > { %v1513_v45 = vpack.c.bf16 %v1498_v43, %v1497_v42  ;;  %v2253_v46 = vpop.f32.mrb[40].mxu0 }
 0x4bb   : > { %v1487_v50 = vadd.f32 %v2253_v46, %v2740_v31  ;;  %v1429_v51 = vpop.f32.mrb[41].mxu0 }
 0x4bc   : > { %v1485_v54 = vadd.f32 %v2740_v31, %v1429_v51  ;;  %v2254_v55 = vpop.f32.mrb[42].mxu0  ;;  %2271 = vmatprep.mubr.msk.bf16.mxu1 %vm754_vm0, %v1513_v45 }
 0x4bd   : > { %v1488_v56 = vadd.f32 %v2254_v55, %v2740_v31  ;;  %v1432_v57 = vpop.f32.mrb[43].mxu0  ;;  %2272 = vmatmul.mubr.msk.bf16.vlgmr.msra.gmra.mrb[44].mxu1 %vm754_vm0, %v1514_v44  ;;  %v1503_v59 = vmax.f32 %v1487_v50, 0.0 }
 0x4be   : > { %v1486_v58 = vadd.f32 %v2740_v31, %v1432_v57  ;;  %2288 = vmatpush3.bf16.msra.mxu1 %v2414_v16  ;;  %v1501_v0 = vmax.f32 %v1485_v54, 0.0 }
 0x4bf   : > { %v1504_v61 = vmax.f32 %v1488_v56, 0.0  ;;  %2289 = vmatprep.subr.bf16.mxu1 %v2415_v52 }
 0x4c0   : > { %v1502_v3 = vmax.f32 %v1486_v58, 0.0 }
 0x4c1   : > { %v1516_v4 = vpack.c.bf16 %v1504_v61, %v1503_v59 }
 0x4c2   : > { %v1515_v5 = vpack.c.bf16 %v1502_v3, %v1501_v0  ;;  %v2257_v6 = vpop.f32.mrb[44].mxu0  ;;  %2290 = vmatpush3.bf16.msra.mxu1 %v2415_v52 }
 0x4c3   : > { %v1491_v7 = vadd.f32 %v2257_v6, %v2740_v31  ;;  %v1445_v8 = vpop.f32.mrb[45].mxu0  ;;  %2291 = vmatprep.subr.bf16.mxu1 %v2416_v62 }
 0x4c4   : > { %v1489_v11 = vadd.f32 %v2740_v31, %v1445_v8  ;;  %v2258_v12 = vpop.f32.mrb[46].mxu0  ;;  %2275 = vmatprep.mubr.msk.bf16.mxu1 %vm754_vm0, %v1515_v5 }
 0x4c5   : > { %v1492_v13 = vadd.f32 %v2258_v12, %v2740_v31  ;;  %v1448_v14 = vpop.f32.mrb[47].mxu0  ;;  %2276 = vmatmul.mubr.msk.bf16.gmra.mrb[48].mxu1 %vm754_vm0, %v1516_v4  ;;  %v1507_v17 = vmax.f32 %v1491_v7, 0.0 }
 0x4c6   : > { %v1490_v37 = vadd.f32 %v2740_v31, %v1448_v14  ;;  %2292 = vmatpush3.bf16.msra.mxu1 %v2416_v62  ;;  %v1505_v20 = vmax.f32 %v1489_v11, 0.0 }
 0x4c7   : > { %v1508_v19 = vmax.f32 %v1492_v13, 0.0  ;;  %2293 = vmatprep.subr.bf16.mxu1 %v2417_v10 }
 0x4c8   : > { %v1506_v21 = vmax.f32 %v1490_v37, 0.0 }
 0x4c9   : > { %v1518_v23 = vpack.c.bf16 %v1508_v19, %v1507_v17 }
 0x4ca   : > { %v1517_v24 = vpack.c.bf16 %v1506_v21, %v1505_v20  ;;  %v2261_v25 = vpop.f32.mrb[48].mxu0  ;;  %2294 = vmatpush3.bf16.msra.mxu1 %v2417_v10 }
 0x4cb   : > { %v1495_v26 = vadd.f32 %v2261_v25, %v2740_v31  ;;  %v1461_v27 = vpop.f32.mrb[49].mxu0 }
 0x4cc   : > { %v1493_v28 = vadd.f32 %v2740_v31, %v1461_v27  ;;  %v2262_v30 = vpop.f32.mrb[50].mxu0  ;;  %2279 = vmatprep.mubr.msk.bf16.mxu1 %vm754_vm0, %v1517_v24 }
 0x4cd   : > { %v1496_v33 = vadd.f32 %v2262_v30, %v2740_v31  ;;  %v1464_v34 = vpop.f32.mrb[51].mxu0  ;;  %2280 = vmatmul.mubr.msk.bf16.gmra.mrb[52].mxu1 %vm754_vm0, %v1518_v23  ;;  %v1511_v15 = vmax.f32 %v1495_v26, 0.0 }
 0x4ce   : > { %v1494_v35 = vadd.f32 %v2740_v31, %v1464_v34  ;;  %v1509_v32 = vmax.f32 %v1493_v28, 0.0 }
 0x4cf   : > { %v1512_v16 = vmax.f32 %v1496_v33, 0.0 }
 0x4d0   : > { %v1510_v47 = vmax.f32 %v1494_v35, 0.0 }
 0x4d1   : > { %v1520_v48 = vpack.c.bf16 %v1512_v16, %v1511_v15 }
 0x4d2   : > { %v1519_v1 = vpack.c.bf16 %v1510_v47, %v1509_v32 }
 0x4d4   : > { %2283 = vmatprep.mubr.msk.bf16.mxu1 %vm754_vm0, %v1519_v1 }
 0x4d5   : > { %2284 = vmatmul.mubr.msk.bf16.gmra.mrb[56].mxu1 %vm754_vm0, %v1520_v48 }
 0x4d6   : > { %2295 = vmatprep.mubr.msk.bf16.mxu1 %vm754_vm0, %v2582_v49  ;;  %v2018_v49 = vld [vmem:[%s2829_s9 + $0x5] ss:$0 sm:$0xff] }
 0x4dd   : > { %2296 = vmatmul.mubr.msk.bf16.vlgmr.msra.gmra.mrb[44].mxu1 %vm754_vm0, %v2588_v60 }
 0x4de   : > { %2299 = vmatprep.mubr.msk.bf16.mxu1 %vm754_vm0, %v2594_v9 }
 0x4e5   : > { %2300 = vmatmul.mubr.msk.bf16.gmra.mrb[48].mxu1 %vm754_vm0, %v2600_v18 }
 0x4e6   : > { %2303 = vmatprep.mubr.msk.bf16.mxu1 %vm754_vm0, %v2606_v29 }
 0x4ed   : > { %2304 = vmatmul.mubr.msk.bf16.gmra.mrb[52].mxu1 %vm754_vm0, %v2612_v41 }
 0x4ee   : > { %2307 = vmatprep.mubr.msk.bf16.mxu1 %vm754_vm0, %v2618_v53 }
 0x4f5   : > { %2308 = vmatmul.mubr.msk.bf16.gmra.mrb[56].mxu1 %vm754_vm0, %v2624_v63 }
 0x5b0   : > { %v2297_v60 = vpop.f32.mrb[44].mxu1 }
 0x5b1   : > { %v1810_v9 = vadd.f32 %v2297_v60, %v2018_v49  ;;  %v1740_v18 = vpop.f32.mrb[45].mxu1 }
 0x5b2   : > { %v1808_v29 = vadd.f32 %v2018_v49, %v1740_v18  ;;  %v2298_v41 = vpop.f32.mrb[46].mxu1 }
 0x5b3   : > { %1826 = vst [vmem:[%s2799_s18 + $0x10] sm:$0xff] %v1810_v9  ;;  %v1811_v53 = vadd.f32 %v2298_v41, %v2018_v49  ;;  %v1743_v63 = vpop.f32.mrb[47].mxu1 }
 0x5b4   : > { %1824 = vst [vmem:[%s2799_s18] sm:$0xff] %v1808_v29  ;;  %v1809_v31 = vadd.f32 %v2018_v49, %v1743_v63 }
 0x5b5   : > { %1827 = vst [vmem:[%s2799_s18 + $0x18] sm:$0xff] %v1811_v53 }
 0x5b6   : > { %1825 = vst [vmem:[%s2799_s18 + $0x8] sm:$0xff] %v1809_v31 }
 0x5b8   : > { %v2301_v2 = vpop.f32.mrb[48].mxu1 }
 0x5b9   : > { %v1814_v22 = vadd.f32 %v2301_v2, %v2018_v49  ;;  %v1756_v36 = vpop.f32.mrb[49].mxu1 }
 0x5ba   : > { %v1812_v38 = vadd.f32 %v2018_v49, %v1756_v36  ;;  %v2302_v39 = vpop.f32.mrb[50].mxu1 }
 0x5bb   : > { %1830 = vst [vmem:[%s2799_s18 + $0x30] sm:$0xff] %v1814_v22  ;;  %v1815_v40 = vadd.f32 %v2302_v39, %v2018_v49  ;;  %v1759_v42 = vpop.f32.mrb[51].mxu1 }
 0x5bc   : > { %1828 = vst [vmem:[%s2799_s18 + $0x20] sm:$0xff] %v1812_v38  ;;  %v1813_v43 = vadd.f32 %v2018_v49, %v1759_v42 }
 0x5bd   : > { %1831 = vst [vmem:[%s2799_s18 + $0x38] sm:$0xff] %v1815_v40 }
 0x5be   : > { %1829 = vst [vmem:[%s2799_s18 + $0x28] sm:$0xff] %v1813_v43 }
 0x5c0   : > { %v2305_v44 = vpop.f32.mrb[52].mxu1 }
 0x5c1   : > { %v1818_v45 = vadd.f32 %v2305_v44, %v2018_v49  ;;  %v1772_v46 = vpop.f32.mrb[53].mxu1 }
 0x5c2   : > { %v1816_v50 = vadd.f32 %v2018_v49, %v1772_v46  ;;  %v2306_v51 = vpop.f32.mrb[54].mxu1 }
 0x5c3   : > { %1834 = vst [vmem:[%s2799_s18 + $0x50] sm:$0xff] %v1818_v45  ;;  %v1819_v52 = vadd.f32 %v2306_v51, %v2018_v49  ;;  %v1775_v54 = vpop.f32.mrb[55].mxu1 }
 0x5c4   : > { %1832 = vst [vmem:[%s2799_s18 + $0x40] sm:$0xff] %v1816_v50  ;;  %v1817_v55 = vadd.f32 %v2018_v49, %v1775_v54 }
 0x5c5   : > { %1835 = vst [vmem:[%s2799_s18 + $0x58] sm:$0xff] %v1819_v52 }
 0x5c6   : > { %1833 = vst [vmem:[%s2799_s18 + $0x48] sm:$0xff] %v1817_v55 }
 0x5c8   : > { %v2309_v56 = vpop.f32.mrb[56].mxu1 }
 0x5c9   : > { %v1822_v57 = vadd.f32 %v2309_v56, %v2018_v49  ;;  %v1788_v58 = vpop.f32.mrb[57].mxu1 }
 0x5ca   : > { %v1820_v59 = vadd.f32 %v2018_v49, %v1788_v58  ;;  %v2310_v61 = vpop.f32.mrb[58].mxu1 }
 0x5cb   : > { %1838 = vst [vmem:[%s2799_s18 + $0x70] sm:$0xff] %v1822_v57  ;;  %v1823_v62 = vadd.f32 %v2310_v61, %v2018_v49  ;;  %v1791_v0 = vpop.f32.mrb[59].mxu1 }
 0x5cc   : > { %1836 = vst [vmem:[%s2799_s18 + $0x60] sm:$0xff] %v1820_v59  ;;  %v1821_v3 = vadd.f32 %v2018_v49, %v1791_v0 }
 0x5cd   : > { %1839 = vst [vmem:[%s2799_s18 + $0x78] sm:$0xff] %v1823_v62 }
 0x5ce   : > { %1837 = vst [vmem:[%s2799_s18 + $0x68] sm:$0xff] %v1821_v3 }
 0x5cf PF: > { %s20_s13 = sadd.s32 1, %s2424_s13  }
 0x5d0   : > { %p17_p4 = scmp.ge.s32.totalorder %s20_s13, 4  }
 0x5d2   :  { %19 = sbr.rel (!%p17_p4) target bundleno = 1 (0x1), region = 90 }

</bundles_post_ra>
